<compile_context>
chip_gen: v5e
topology: v5e:2x2
jax: 0.10.0
libtpu: 0.0.40
codegen_flags: <defaults>
</compile_context>

<pallas_src>
import jax
import jax.numpy as jnp
from jax.experimental import pallas as pl
from jax.experimental.pallas import tpu as pltpu


# ----------------------------------------------------------------------------
# Fused kernel: sequential ensemble chain + weighting head + in-kernel select.
# Single invocation, everything resident in VMEM, model loop unrolled.
# ----------------------------------------------------------------------------
def _fused_kernel(obs_ref, act_ref, idx_ref,
                  w1o_ref, w1a_ref, b1_ref,
                  w2_ref, b2_ref,
                  wmu_ref, bmu_ref,
                  we1o_ref, we1a_ref, be1_ref,
                  we2_ref, be2_ref,
                  we3_ref, be3_ref,
                  wemu_ref, bemu_ref,
                  next_obs_ref, wrew_ref):
    o0 = obs_ref[...]                     # original observations (B, obs_dim)
    a = act_ref[...]                      # (B, act_dim)
    idx = idx_ref[...]                    # (B, 1) int32 random model index
    obs_dim = o0.shape[1]
    num_models = w1o_ref.shape[0]

    # --- weighting head (independent of the ensemble chain; z folded into be1)
    hw = jnp.dot(o0, we1o_ref[...], preferred_element_type=jnp.float32)
    hw = hw + jnp.dot(a, we1a_ref[...], preferred_element_type=jnp.float32)
    hw = jnp.tanh(hw + be1_ref[...])
    hw = jnp.tanh(jnp.dot(hw, we2_ref[...], preferred_element_type=jnp.float32)
                  + be2_ref[...])
    hw = jnp.tanh(jnp.dot(hw, we3_ref[...], preferred_element_type=jnp.float32)
                  + be3_ref[...])
    w = jax.nn.sigmoid(
        jnp.dot(hw, wemu_ref[...], preferred_element_type=jnp.float32)
        + bemu_ref[...])                  # (B, num_models)
    den = jnp.sum(jnp.abs(w), axis=1, keepdims=True)

    # --- sequential ensemble chain (model m consumes model m-1's prediction)
    o = o0
    sel = jnp.zeros_like(o0)
    num = jnp.zeros((o0.shape[0], 1), jnp.float32)
    for m in range(num_models):           # static unrolled loop, all weights resident
        h = jnp.dot(o, w1o_ref[m], preferred_element_type=jnp.float32)
        h = h + jnp.dot(a, w1a_ref[m], preferred_element_type=jnp.float32)
        h = jnp.maximum(h + b1_ref[m], 0.0)
        h = jnp.maximum(
            jnp.dot(h, w2_ref[m], preferred_element_type=jnp.float32) + b2_ref[m],
            0.0)
        mu = jnp.dot(h, wmu_ref[m], preferred_element_type=jnp.float32) + bmu_ref[m]

        o = o + mu[:, :obs_dim]                       # next_x = x + mu[:, :-1]
        rew_m = mu[:, obs_dim:obs_dim + 1]            # mu[:, -1].view(-1, 1)
        num = num + rew_m * w[:, m:m + 1]             # running weighted-reward sum
        sel = jnp.where(idx == m, o, sel)             # per-row random model pick

    next_obs_ref[...] = sel
    wrew_ref[...] = num * pl.reciprocal(den, approx=True)


# ----------------------------------------------------------------------------
# Wrapper: host-side z folding, random index draw, single pallas_call.
# ----------------------------------------------------------------------------
def ensemble_dynamics_forward(params, obs, action, z, key):
    num_models = params["w1o"].shape[0]
    B, obs_dim = obs.shape

    # Fold latent contribution into the first weighting-layer bias:
    # tanh(o@We1o + a@We1a + z@We1z + be1) == tanh(o@We1o + a@We1a + be1_eff)
    be1_eff = params["be1"] + z @ params["we1z"]

    # Random per-row model selection (np.random.randint equivalent).
    idx = jax.random.randint(key, (B,), 0, num_models, dtype=jnp.int32)
    idx2d = idx[:, None]

    vmem = pltpu.MemorySpace.VMEM
    n_inputs = 19
    sel_next_obs, weighted_rewards = pl.pallas_call(
        _fused_kernel,
        out_shape=(
            jax.ShapeDtypeStruct((B, obs_dim), jnp.float32),
            jax.ShapeDtypeStruct((B, 1), jnp.float32),
        ),
        in_specs=[pl.BlockSpec(memory_space=vmem)] * n_inputs,
        out_specs=(
            pl.BlockSpec(memory_space=vmem),
            pl.BlockSpec(memory_space=vmem),
        ),
    )(obs, action, idx2d,
      params["w1o"], params["w1a"], params["b1"],
      params["w2"], params["b2"],
      params["wmu"], params["bmu"],
      params["we1o"], params["we1a"], be1_eff,
      params["we2"], params["be2"],
      params["we3"], params["be3"],
      params["wemu"], params["bemu"])

    return sel_next_obs, weighted_rewards, idx


# ----------------------------------------------------------------------------
# Pure-JAX reference (same math, z path NOT folded -> cross-checks the fold).
# ----------------------------------------------------------------------------
def reference_forward(params, obs, action, z, idx):
    num_models = params["w1o"].shape[0]
    B = obs.shape[0]
    o = obs
    next_list, rew_list = [], []
    for m in range(num_models):
        h = jnp.maximum(o @ params["w1o"][m] + action @ params["w1a"][m]
                        + params["b1"][m], 0.0)
        h = jnp.maximum(h @ params["w2"][m] + params["b2"][m], 0.0)
        mu = h @ params["wmu"][m] + params["bmu"][m]
        o = o + mu[:, :-1]
        next_list.append(o)
        rew_list.append(mu[:, -1:])
    next_obs = jnp.stack(next_list, axis=1)             # (B, num_models, obs_dim)
    rewards = jnp.concatenate(rew_list, axis=1)         # (B, num_models)

    h = jnp.tanh(obs @ params["we1o"] + action @ params["we1a"]
                 + z @ params["we1z"] + params["be1"])
    h = jnp.tanh(h @ params["we2"] + params["be2"])
    h = jnp.tanh(h @ params["we3"] + params["be3"])
    w = jax.nn.sigmoid(h @ params["wemu"] + params["bemu"])
    wr = (jnp.sum(rewards * w, axis=1, keepdims=True)
          / jnp.sum(jnp.abs(w), axis=1, keepdims=True))
    sel = next_obs[jnp.arange(B), idx]
    return sel, wr


def make_params(key, num_models, obs_dim, act_dim, enc_size, latent, hidden):
    ks = jax.random.split(key, 16)
    s = 0.1
    n = jax.random.normal
    return {
        # per-model deterministic DynamicsModel params (ensemble axis first)
        "w1o": s * n(ks[0], (num_models, obs_dim, hidden), jnp.float32),
        "w1a": s * n(ks[1], (num_models, act_dim, hidden), jnp.float32),
        "b1":  s * n(ks[2], (num_models, 1, hidden), jnp.float32),
        "w2":  s * n(ks[3], (num_models, hidden, hidden), jnp.float32),
        "b2":  s * n(ks[4], (num_models, 1, hidden), jnp.float32),
        "wmu": s * n(ks[5], (num_models, hidden, obs_dim + 1), jnp.float32),
        "bmu": s * n(ks[6], (num_models, 1, obs_dim + 1), jnp.float32),
        # ensemble weighting encoder (3x Linear+Tanh) + mu head
        "we1o": s * n(ks[7], (obs_dim, latent), jnp.float32),
        "we1a": s * n(ks[8], (act_dim, latent), jnp.float32),
        "we1z": s * n(ks[9], (enc_size, latent), jnp.float32),
        "be1":  s * n(ks[10], (1, latent), jnp.float32),
        "we2":  s * n(ks[11], (latent, latent), jnp.float32),
        "be2":  s * n(ks[12], (1, latent), jnp.float32),
        "we3":  s * n(ks[13], (latent, latent), jnp.float32),
        "be3":  s * n(ks[14], (1, latent), jnp.float32),
        "wemu": s * n(ks[15], (latent, num_models), jnp.float32),
        "bemu": jnp.zeros((1, num_models), jnp.float32),
    }


if __name__ == "__main__":
    B, obs_dim, act_dim = 8, 16, 4
    enc_size, latent, hidden, num_models = 8, 32, 32, 4

    root = jax.random.PRNGKey(0)
    kp, kx, ka, kz, kidx = jax.random.split(root, 5)

    params = make_params(kp, num_models, obs_dim, act_dim, enc_size, latent, hidden)
    obs = jax.random.normal(kx, (B, obs_dim), jnp.float32)
    action = jax.random.normal(ka, (B, act_dim), jnp.float32)
    z = jax.random.normal(kz, (1, enc_size), jnp.float32)  # stand-in transformer latent

    next_obs, weighted_rew, idx = ensemble_dynamics_forward(params, obs, action, z, kidx)
    jax.block_until_ready(next_obs)
    jax.block_until_ready(weighted_rew)

    ref_next, ref_rew = reference_forward(params, obs, action, z, idx)
    assert next_obs.shape == (B, obs_dim) and weighted_rew.shape == (B, 1)
    assert jnp.allclose(next_obs, ref_next, atol=1e-4, rtol=1e-4), "next_obs mismatch"
    # slightly looser tolerance: weighted reward uses the EUP approx reciprocal
    assert jnp.allclose(weighted_rew, ref_rew, atol=2e-3, rtol=2e-3), "reward mismatch"

    print("KERNEL_OK")
</pallas_src>

<mosaic_0001>
module attributes {stable_mosaic.version = 11 : i64} {
  func.func @_fused_kernel(%arg0: memref<8x16xf32, #tpu.memory_space<vmem>>, %arg1: memref<8x4xf32, #tpu.memory_space<vmem>>, %arg2: memref<8x1xi32, #tpu.memory_space<vmem>>, %arg3: memref<4x16x32xf32, #tpu.memory_space<vmem>>, %arg4: memref<4x4x32xf32, #tpu.memory_space<vmem>>, %arg5: memref<4x1x32xf32, #tpu.memory_space<vmem>>, %arg6: memref<4x32x32xf32, #tpu.memory_space<vmem>>, %arg7: memref<4x1x32xf32, #tpu.memory_space<vmem>>, %arg8: memref<4x32x17xf32, #tpu.memory_space<vmem>>, %arg9: memref<4x1x17xf32, #tpu.memory_space<vmem>>, %arg10: memref<16x32xf32, #tpu.memory_space<vmem>>, %arg11: memref<4x32xf32, #tpu.memory_space<vmem>>, %arg12: memref<1x32xf32, #tpu.memory_space<vmem>>, %arg13: memref<32x32xf32, #tpu.memory_space<vmem>>, %arg14: memref<1x32xf32, #tpu.memory_space<vmem>>, %arg15: memref<32x32xf32, #tpu.memory_space<vmem>>, %arg16: memref<1x32xf32, #tpu.memory_space<vmem>>, %arg17: memref<32x4xf32, #tpu.memory_space<vmem>>, %arg18: memref<1x4xf32, #tpu.memory_space<vmem>>, %arg19: memref<8x16xf32, #tpu.memory_space<vmem>>, %arg20: memref<8x1xf32, #tpu.memory_space<vmem>>) attributes {dimension_semantics = [], scalar_prefetch = 0 : i64, scratch_operands = 0 : i64, tpu.core_type = #tpu.core_type<tc>} {
    %c0 = arith.constant 0 : index
    %c0_0 = arith.constant 0 : index
    %0 = vector.load %arg0[%c0, %c0_0] : memref<8x16xf32, #tpu.memory_space<vmem>>, vector<8x16xf32>
    %c0_1 = arith.constant 0 : index
    %c0_2 = arith.constant 0 : index
    %1 = vector.load %arg1[%c0_1, %c0_2] : memref<8x4xf32, #tpu.memory_space<vmem>>, vector<8x4xf32>
    %c0_3 = arith.constant 0 : index
    %c0_4 = arith.constant 0 : index
    %2 = vector.load %arg2[%c0_3, %c0_4] : memref<8x1xi32, #tpu.memory_space<vmem>>, vector<8x1xi32>
    %c0_5 = arith.constant 0 : index
    %c0_6 = arith.constant 0 : index
    %3 = vector.load %arg10[%c0_5, %c0_6] : memref<16x32xf32, #tpu.memory_space<vmem>>, vector<16x32xf32>
    %cst = arith.constant dense<0.000000e+00> : vector<8x32xf32>
    %4 = tpu.matmul %0, %3, %cst {dimension_numbers = #tpu.dot_dimension_numbers<[1], [0], [0], [1], [0, 0, 1, 1], [], []>} : vector<8x16xf32>, vector<16x32xf32>, vector<8x32xf32> -> vector<8x32xf32>
    %c0_7 = arith.constant 0 : index
    %c0_8 = arith.constant 0 : index
    %5 = vector.load %arg11[%c0_7, %c0_8] : memref<4x32xf32, #tpu.memory_space<vmem>>, vector<4x32xf32>
    %cst_9 = arith.constant dense<0.000000e+00> : vector<8x32xf32>
    %6 = tpu.matmul %1, %5, %cst_9 {dimension_numbers = #tpu.dot_dimension_numbers<[1], [0], [0], [1], [0, 0, 1, 1], [], []>} : vector<8x4xf32>, vector<4x32xf32>, vector<8x32xf32> -> vector<8x32xf32>
    %7 = arith.addf %4, %6 : vector<8x32xf32>
    %c0_10 = arith.constant 0 : index
    %c0_11 = arith.constant 0 : index
    %8 = vector.load %arg12[%c0_10, %c0_11] : memref<1x32xf32, #tpu.memory_space<vmem>>, vector<1x32xf32>
    %9 = vector.broadcast %8 : vector<1x32xf32> to vector<8x32xf32>
    %10 = arith.addf %7, %9 : vector<8x32xf32>
    %11 = math.tanh %10 : vector<8x32xf32>
    %c0_12 = arith.constant 0 : index
    %c0_13 = arith.constant 0 : index
    %12 = vector.load %arg13[%c0_12, %c0_13] : memref<32x32xf32, #tpu.memory_space<vmem>>, vector<32x32xf32>
    %cst_14 = arith.constant dense<0.000000e+00> : vector<8x32xf32>
    %13 = tpu.matmul %11, %12, %cst_14 {dimension_numbers = #tpu.dot_dimension_numbers<[1], [0], [0], [1], [0, 0, 1, 1], [], []>} : vector<8x32xf32>, vector<32x32xf32>, vector<8x32xf32> -> vector<8x32xf32>
    %c0_15 = arith.constant 0 : index
    %c0_16 = arith.constant 0 : index
    %14 = vector.load %arg14[%c0_15, %c0_16] : memref<1x32xf32, #tpu.memory_space<vmem>>, vector<1x32xf32>
    %15 = vector.broadcast %14 : vector<1x32xf32> to vector<8x32xf32>
    %16 = arith.addf %13, %15 : vector<8x32xf32>
    %17 = math.tanh %16 : vector<8x32xf32>
    %c0_17 = arith.constant 0 : index
    %c0_18 = arith.constant 0 : index
    %18 = vector.load %arg15[%c0_17, %c0_18] : memref<32x32xf32, #tpu.memory_space<vmem>>, vector<32x32xf32>
    %cst_19 = arith.constant dense<0.000000e+00> : vector<8x32xf32>
    %19 = tpu.matmul %17, %18, %cst_19 {dimension_numbers = #tpu.dot_dimension_numbers<[1], [0], [0], [1], [0, 0, 1, 1], [], []>} : vector<8x32xf32>, vector<32x32xf32>, vector<8x32xf32> -> vector<8x32xf32>
    %c0_20 = arith.constant 0 : index
    %c0_21 = arith.constant 0 : index
    %20 = vector.load %arg16[%c0_20, %c0_21] : memref<1x32xf32, #tpu.memory_space<vmem>>, vector<1x32xf32>
    %21 = vector.broadcast %20 : vector<1x32xf32> to vector<8x32xf32>
    %22 = arith.addf %19, %21 : vector<8x32xf32>
    %23 = math.tanh %22 : vector<8x32xf32>
    %c0_22 = arith.constant 0 : index
    %c0_23 = arith.constant 0 : index
    %24 = vector.load %arg17[%c0_22, %c0_23] : memref<32x4xf32, #tpu.memory_space<vmem>>, vector<32x4xf32>
    %cst_24 = arith.constant dense<0.000000e+00> : vector<8x4xf32>
    %25 = tpu.matmul %23, %24, %cst_24 {dimension_numbers = #tpu.dot_dimension_numbers<[1], [0], [0], [1], [0, 0, 1, 1], [], []>} : vector<8x32xf32>, vector<32x4xf32>, vector<8x4xf32> -> vector<8x4xf32>
    %c0_25 = arith.constant 0 : index
    %c0_26 = arith.constant 0 : index
    %26 = vector.load %arg18[%c0_25, %c0_26] : memref<1x4xf32, #tpu.memory_space<vmem>>, vector<1x4xf32>
    %27 = vector.broadcast %26 : vector<1x4xf32> to vector<8x4xf32>
    %28 = arith.addf %25, %27 : vector<8x4xf32>
    %29 = arith.negf %28 : vector<8x4xf32>
    %30 = math.exp %29 : vector<8x4xf32>
    %cst_27 = arith.constant 1.000000e+00 : f32
    %31 = vector.broadcast %cst_27 : f32 to vector<8x4xf32>
    %32 = arith.addf %31, %30 : vector<8x4xf32>
    %33 = arith.divf %31, %32 : vector<8x4xf32>
    %34 = math.absf %33 : vector<8x4xf32>
    %cst_28 = arith.constant dense<0.000000e+00> : vector<8xf32>
    %35 = vector.multi_reduction <add>, %34, %cst_28 [1] : vector<8x4xf32> to vector<8xf32>
    %36 = vector.shape_cast %35 : vector<8xf32> to vector<8x1xf32>
    %cst_29 = arith.constant 0.000000e+00 : f32
    %37 = vector.broadcast %cst_29 : f32 to vector<8x16xf32>
    %cst_30 = arith.constant 0.000000e+00 : f32
    %38 = vector.broadcast %cst_30 : f32 to vector<8x1xf32>
    %c0_31 = arith.constant 0 : index
    %c0_32 = arith.constant 0 : index
    %c0_33 = arith.constant 0 : index
    %39 = vector.load %arg3[%c0_31, %c0_32, %c0_33] : memref<4x16x32xf32, #tpu.memory_space<vmem>>, vector<1x16x32xf32>
    %40 = vector.shape_cast %39 : vector<1x16x32xf32> to vector<16x32xf32>
    %cst_34 = arith.constant dense<0.000000e+00> : vector<8x32xf32>
    %41 = tpu.matmul %0, %40, %cst_34 {dimension_numbers = #tpu.dot_dimension_numbers<[1], [0], [0], [1], [0, 0, 1, 1], [], []>} : vector<8x16xf32>, vector<16x32xf32>, vector<8x32xf32> -> vector<8x32xf32>
    %c0_35 = arith.constant 0 : index
    %c0_36 = arith.constant 0 : index
    %c0_37 = arith.constant 0 : index
    %42 = vector.load %arg4[%c0_35, %c0_36, %c0_37] : memref<4x4x32xf32, #tpu.memory_space<vmem>>, vector<1x4x32xf32>
    %43 = vector.shape_cast %42 : vector<1x4x32xf32> to vector<4x32xf32>
    %cst_38 = arith.constant dense<0.000000e+00> : vector<8x32xf32>
    %44 = tpu.matmul %1, %43, %cst_38 {dimension_numbers = #tpu.dot_dimension_numbers<[1], [0], [0], [1], [0, 0, 1, 1], [], []>} : vector<8x4xf32>, vector<4x32xf32>, vector<8x32xf32> -> vector<8x32xf32>
    %45 = arith.addf %41, %44 : vector<8x32xf32>
    %c0_39 = arith.constant 0 : index
    %c0_40 = arith.constant 0 : index
    %c0_41 = arith.constant 0 : index
    %46 = vector.load %arg5[%c0_39, %c0_40, %c0_41] : memref<4x1x32xf32, #tpu.memory_space<vmem>>, vector<1x1x32xf32>
    %47 = vector.shape_cast %46 : vector<1x1x32xf32> to vector<1x32xf32>
    %48 = vector.broadcast %47 : vector<1x32xf32> to vector<8x32xf32>
    %49 = arith.addf %45, %48 : vector<8x32xf32>
    %cst_42 = arith.constant 0.000000e+00 : f32
    %50 = vector.broadcast %cst_42 : f32 to vector<8x32xf32>
    %51 = arith.maximumf %49, %50 : vector<8x32xf32>
    %c0_43 = arith.constant 0 : index
    %c0_44 = arith.constant 0 : index
    %c0_45 = arith.constant 0 : index
    %52 = vector.load %arg6[%c0_43, %c0_44, %c0_45] : memref<4x32x32xf32, #tpu.memory_space<vmem>>, vector<1x32x32xf32>
    %53 = vector.shape_cast %52 : vector<1x32x32xf32> to vector<32x32xf32>
    %cst_46 = arith.constant dense<0.000000e+00> : vector<8x32xf32>
    %54 = tpu.matmul %51, %53, %cst_46 {dimension_numbers = #tpu.dot_dimension_numbers<[1], [0], [0], [1], [0, 0, 1, 1], [], []>} : vector<8x32xf32>, vector<32x32xf32>, vector<8x32xf32> -> vector<8x32xf32>
    %c0_47 = arith.constant 0 : index
    %c0_48 = arith.constant 0 : index
    %c0_49 = arith.constant 0 : index
    %55 = vector.load %arg7[%c0_47, %c0_48, %c0_49] : memref<4x1x32xf32, #tpu.memory_space<vmem>>, vector<1x1x32xf32>
    %56 = vector.shape_cast %55 : vector<1x1x32xf32> to vector<1x32xf32>
    %57 = vector.broadcast %56 : vector<1x32xf32> to vector<8x32xf32>
    %58 = arith.addf %54, %57 : vector<8x32xf32>
    %cst_50 = arith.constant 0.000000e+00 : f32
    %59 = vector.broadcast %cst_50 : f32 to vector<8x32xf32>
    %60 = arith.maximumf %58, %59 : vector<8x32xf32>
    %c0_51 = arith.constant 0 : index
    %c0_52 = arith.constant 0 : index
    %c0_53 = arith.constant 0 : index
    %61 = vector.load %arg8[%c0_51, %c0_52, %c0_53] : memref<4x32x17xf32, #tpu.memory_space<vmem>>, vector<1x32x17xf32>
    %62 = vector.shape_cast %61 : vector<1x32x17xf32> to vector<32x17xf32>
    %cst_54 = arith.constant dense<0.000000e+00> : vector<8x17xf32>
    %63 = tpu.matmul %60, %62, %cst_54 {dimension_numbers = #tpu.dot_dimension_numbers<[1], [0], [0], [1], [0, 0, 1, 1], [], []>} : vector<8x32xf32>, vector<32x17xf32>, vector<8x17xf32> -> vector<8x17xf32>
    %c0_55 = arith.constant 0 : index
    %c0_56 = arith.constant 0 : index
    %c0_57 = arith.constant 0 : index
    %64 = vector.load %arg9[%c0_55, %c0_56, %c0_57] : memref<4x1x17xf32, #tpu.memory_space<vmem>>, vector<1x1x17xf32>
    %65 = vector.shape_cast %64 : vector<1x1x17xf32> to vector<1x17xf32>
    %66 = vector.broadcast %65 : vector<1x17xf32> to vector<8x17xf32>
    %67 = arith.addf %63, %66 : vector<8x17xf32>
    %68 = vector.extract_strided_slice %67 {offsets = [0, 0], sizes = [8, 16], strides = [1, 1]} : vector<8x17xf32> to vector<8x16xf32>
    %69 = arith.addf %0, %68 : vector<8x16xf32>
    %70 = vector.extract_strided_slice %67 {offsets = [0, 16], sizes = [8, 1], strides = [1, 1]} : vector<8x17xf32> to vector<8x1xf32>
    %71 = vector.extract_strided_slice %33 {offsets = [0, 0], sizes = [8, 1], strides = [1, 1]} : vector<8x4xf32> to vector<8x1xf32>
    %72 = arith.mulf %70, %71 : vector<8x1xf32>
    %73 = arith.addf %38, %72 : vector<8x1xf32>
    %c0_i32 = arith.constant 0 : i32
    %74 = vector.broadcast %c0_i32 : i32 to vector<8x1xi32>
    %75 = arith.cmpi eq, %2, %74 : vector<8x1xi32>
    %76 = vector.shape_cast %75 : vector<8x1xi1> to vector<8x1xi1>
    %77 = vector.broadcast %76 : vector<8x1xi1> to vector<8x16xi1>
    %78 = arith.select %77, %69, %37 : vector<8x16xi1>, vector<8x16xf32>
    %c1 = arith.constant 1 : index
    %c0_58 = arith.constant 0 : index
    %c0_59 = arith.constant 0 : index
    %79 = vector.load %arg3[%c1, %c0_58, %c0_59] : memref<4x16x32xf32, #tpu.memory_space<vmem>>, vector<1x16x32xf32>
    %80 = vector.shape_cast %79 : vector<1x16x32xf32> to vector<16x32xf32>
    %cst_60 = arith.constant dense<0.000000e+00> : vector<8x32xf32>
    %81 = tpu.matmul %69, %80, %cst_60 {dimension_numbers = #tpu.dot_dimension_numbers<[1], [0], [0], [1], [0, 0, 1, 1], [], []>} : vector<8x16xf32>, vector<16x32xf32>, vector<8x32xf32> -> vector<8x32xf32>
    %c1_61 = arith.constant 1 : index
    %c0_62 = arith.constant 0 : index
    %c0_63 = arith.constant 0 : index
    %82 = vector.load %arg4[%c1_61, %c0_62, %c0_63] : memref<4x4x32xf32, #tpu.memory_space<vmem>>, vector<1x4x32xf32>
    %83 = vector.shape_cast %82 : vector<1x4x32xf32> to vector<4x32xf32>
    %cst_64 = arith.constant dense<0.000000e+00> : vector<8x32xf32>
    %84 = tpu.matmul %1, %83, %cst_64 {dimension_numbers = #tpu.dot_dimension_numbers<[1], [0], [0], [1], [0, 0, 1, 1], [], []>} : vector<8x4xf32>, vector<4x32xf32>, vector<8x32xf32> -> vector<8x32xf32>
    %85 = arith.addf %81, %84 : vector<8x32xf32>
    %c1_65 = arith.constant 1 : index
    %c0_66 = arith.constant 0 : index
    %c0_67 = arith.constant 0 : index
    %86 = vector.load %arg5[%c1_65, %c0_66, %c0_67] : memref<4x1x32xf32, #tpu.memory_space<vmem>>, vector<1x1x32xf32>
    %87 = vector.shape_cast %86 : vector<1x1x32xf32> to vector<1x32xf32>
    %88 = vector.broadcast %87 : vector<1x32xf32> to vector<8x32xf32>
    %89 = arith.addf %85, %88 : vector<8x32xf32>
    %cst_68 = arith.constant 0.000000e+00 : f32
    %90 = vector.broadcast %cst_68 : f32 to vector<8x32xf32>
    %91 = arith.maximumf %89, %90 : vector<8x32xf32>
    %c1_69 = arith.constant 1 : index
    %c0_70 = arith.constant 0 : index
    %c0_71 = arith.constant 0 : index
    %92 = vector.load %arg6[%c1_69, %c0_70, %c0_71] : memref<4x32x32xf32, #tpu.memory_space<vmem>>, vector<1x32x32xf32>
    %93 = vector.shape_cast %92 : vector<1x32x32xf32> to vector<32x32xf32>
    %cst_72 = arith.constant dense<0.000000e+00> : vector<8x32xf32>
    %94 = tpu.matmul %91, %93, %cst_72 {dimension_numbers = #tpu.dot_dimension_numbers<[1], [0], [0], [1], [0, 0, 1, 1], [], []>} : vector<8x32xf32>, vector<32x32xf32>, vector<8x32xf32> -> vector<8x32xf32>
    %c1_73 = arith.constant 1 : index
    %c0_74 = arith.constant 0 : index
    %c0_75 = arith.constant 0 : index
    %95 = vector.load %arg7[%c1_73, %c0_74, %c0_75] : memref<4x1x32xf32, #tpu.memory_space<vmem>>, vector<1x1x32xf32>
    %96 = vector.shape_cast %95 : vector<1x1x32xf32> to vector<1x32xf32>
    %97 = vector.broadcast %96 : vector<1x32xf32> to vector<8x32xf32>
    %98 = arith.addf %94, %97 : vector<8x32xf32>
    %cst_76 = arith.constant 0.000000e+00 : f32
    %99 = vector.broadcast %cst_76 : f32 to vector<8x32xf32>
    %100 = arith.maximumf %98, %99 : vector<8x32xf32>
    %c1_77 = arith.constant 1 : index
    %c0_78 = arith.constant 0 : index
    %c0_79 = arith.constant 0 : index
    %101 = vector.load %arg8[%c1_77, %c0_78, %c0_79] : memref<4x32x17xf32, #tpu.memory_space<vmem>>, vector<1x32x17xf32>
    %102 = vector.shape_cast %101 : vector<1x32x17xf32> to vector<32x17xf32>
    %cst_80 = arith.constant dense<0.000000e+00> : vector<8x17xf32>
    %103 = tpu.matmul %100, %102, %cst_80 {dimension_numbers = #tpu.dot_dimension_numbers<[1], [0], [0], [1], [0, 0, 1, 1], [], []>} : vector<8x32xf32>, vector<32x17xf32>, vector<8x17xf32> -> vector<8x17xf32>
    %c1_81 = arith.constant 1 : index
    %c0_82 = arith.constant 0 : index
    %c0_83 = arith.constant 0 : index
    %104 = vector.load %arg9[%c1_81, %c0_82, %c0_83] : memref<4x1x17xf32, #tpu.memory_space<vmem>>, vector<1x1x17xf32>
    %105 = vector.shape_cast %104 : vector<1x1x17xf32> to vector<1x17xf32>
    %106 = vector.broadcast %105 : vector<1x17xf32> to vector<8x17xf32>
    %107 = arith.addf %103, %106 : vector<8x17xf32>
    %108 = vector.extract_strided_slice %107 {offsets = [0, 0], sizes = [8, 16], strides = [1, 1]} : vector<8x17xf32> to vector<8x16xf32>
    %109 = arith.addf %69, %108 : vector<8x16xf32>
    %110 = vector.extract_strided_slice %107 {offsets = [0, 16], sizes = [8, 1], strides = [1, 1]} : vector<8x17xf32> to vector<8x1xf32>
    %111 = vector.extract_strided_slice %33 {offsets = [0, 1], sizes = [8, 1], strides = [1, 1]} : vector<8x4xf32> to vector<8x1xf32>
    %112 = arith.mulf %110, %111 : vector<8x1xf32>
    %113 = arith.addf %73, %112 : vector<8x1xf32>
    %c1_i32 = arith.constant 1 : i32
    %114 = vector.broadcast %c1_i32 : i32 to vector<8x1xi32>
    %115 = arith.cmpi eq, %2, %114 : vector<8x1xi32>
    %116 = vector.shape_cast %115 : vector<8x1xi1> to vector<8x1xi1>
    %117 = vector.broadcast %116 : vector<8x1xi1> to vector<8x16xi1>
    %118 = arith.select %117, %109, %78 : vector<8x16xi1>, vector<8x16xf32>
    %c2 = arith.constant 2 : index
    %c0_84 = arith.constant 0 : index
    %c0_85 = arith.constant 0 : index
    %119 = vector.load %arg3[%c2, %c0_84, %c0_85] : memref<4x16x32xf32, #tpu.memory_space<vmem>>, vector<1x16x32xf32>
    %120 = vector.shape_cast %119 : vector<1x16x32xf32> to vector<16x32xf32>
    %cst_86 = arith.constant dense<0.000000e+00> : vector<8x32xf32>
    %121 = tpu.matmul %109, %120, %cst_86 {dimension_numbers = #tpu.dot_dimension_numbers<[1], [0], [0], [1], [0, 0, 1, 1], [], []>} : vector<8x16xf32>, vector<16x32xf32>, vector<8x32xf32> -> vector<8x32xf32>
    %c2_87 = arith.constant 2 : index
    %c0_88 = arith.constant 0 : index
    %c0_89 = arith.constant 0 : index
    %122 = vector.load %arg4[%c2_87, %c0_88, %c0_89] : memref<4x4x32xf32, #tpu.memory_space<vmem>>, vector<1x4x32xf32>
    %123 = vector.shape_cast %122 : vector<1x4x32xf32> to vector<4x32xf32>
    %cst_90 = arith.constant dense<0.000000e+00> : vector<8x32xf32>
    %124 = tpu.matmul %1, %123, %cst_90 {dimension_numbers = #tpu.dot_dimension_numbers<[1], [0], [0], [1], [0, 0, 1, 1], [], []>} : vector<8x4xf32>, vector<4x32xf32>, vector<8x32xf32> -> vector<8x32xf32>
    %125 = arith.addf %121, %124 : vector<8x32xf32>
    %c2_91 = arith.constant 2 : index
    %c0_92 = arith.constant 0 : index
    %c0_93 = arith.constant 0 : index
    %126 = vector.load %arg5[%c2_91, %c0_92, %c0_93] : memref<4x1x32xf32, #tpu.memory_space<vmem>>, vector<1x1x32xf32>
    %127 = vector.shape_cast %126 : vector<1x1x32xf32> to vector<1x32xf32>
    %128 = vector.broadcast %127 : vector<1x32xf32> to vector<8x32xf32>
    %129 = arith.addf %125, %128 : vector<8x32xf32>
    %cst_94 = arith.constant 0.000000e+00 : f32
    %130 = vector.broadcast %cst_94 : f32 to vector<8x32xf32>
    %131 = arith.maximumf %129, %130 : vector<8x32xf32>
    %c2_95 = arith.constant 2 : index
    %c0_96 = arith.constant 0 : index
    %c0_97 = arith.constant 0 : index
    %132 = vector.load %arg6[%c2_95, %c0_96, %c0_97] : memref<4x32x32xf32, #tpu.memory_space<vmem>>, vector<1x32x32xf32>
    %133 = vector.shape_cast %132 : vector<1x32x32xf32> to vector<32x32xf32>
    %cst_98 = arith.constant dense<0.000000e+00> : vector<8x32xf32>
    %134 = tpu.matmul %131, %133, %cst_98 {dimension_numbers = #tpu.dot_dimension_numbers<[1], [0], [0], [1], [0, 0, 1, 1], [], []>} : vector<8x32xf32>, vector<32x32xf32>, vector<8x32xf32> -> vector<8x32xf32>
    %c2_99 = arith.constant 2 : index
    %c0_100 = arith.constant 0 : index
    %c0_101 = arith.constant 0 : index
    %135 = vector.load %arg7[%c2_99, %c0_100, %c0_101] : memref<4x1x32xf32, #tpu.memory_space<vmem>>, vector<1x1x32xf32>
    %136 = vector.shape_cast %135 : vector<1x1x32xf32> to vector<1x32xf32>
    %137 = vector.broadcast %136 : vector<1x32xf32> to vector<8x32xf32>
    %138 = arith.addf %134, %137 : vector<8x32xf32>
    %cst_102 = arith.constant 0.000000e+00 : f32
    %139 = vector.broadcast %cst_102 : f32 to vector<8x32xf32>
    %140 = arith.maximumf %138, %139 : vector<8x32xf32>
    %c2_103 = arith.constant 2 : index
    %c0_104 = arith.constant 0 : index
    %c0_105 = arith.constant 0 : index
    %141 = vector.load %arg8[%c2_103, %c0_104, %c0_105] : memref<4x32x17xf32, #tpu.memory_space<vmem>>, vector<1x32x17xf32>
    %142 = vector.shape_cast %141 : vector<1x32x17xf32> to vector<32x17xf32>
    %cst_106 = arith.constant dense<0.000000e+00> : vector<8x17xf32>
    %143 = tpu.matmul %140, %142, %cst_106 {dimension_numbers = #tpu.dot_dimension_numbers<[1], [0], [0], [1], [0, 0, 1, 1], [], []>} : vector<8x32xf32>, vector<32x17xf32>, vector<8x17xf32> -> vector<8x17xf32>
    %c2_107 = arith.constant 2 : index
    %c0_108 = arith.constant 0 : index
    %c0_109 = arith.constant 0 : index
    %144 = vector.load %arg9[%c2_107, %c0_108, %c0_109] : memref<4x1x17xf32, #tpu.memory_space<vmem>>, vector<1x1x17xf32>
    %145 = vector.shape_cast %144 : vector<1x1x17xf32> to vector<1x17xf32>
    %146 = vector.broadcast %145 : vector<1x17xf32> to vector<8x17xf32>
    %147 = arith.addf %143, %146 : vector<8x17xf32>
    %148 = vector.extract_strided_slice %147 {offsets = [0, 0], sizes = [8, 16], strides = [1, 1]} : vector<8x17xf32> to vector<8x16xf32>
    %149 = arith.addf %109, %148 : vector<8x16xf32>
    %150 = vector.extract_strided_slice %147 {offsets = [0, 16], sizes = [8, 1], strides = [1, 1]} : vector<8x17xf32> to vector<8x1xf32>
    %151 = vector.extract_strided_slice %33 {offsets = [0, 2], sizes = [8, 1], strides = [1, 1]} : vector<8x4xf32> to vector<8x1xf32>
    %152 = arith.mulf %150, %151 : vector<8x1xf32>
    %153 = arith.addf %113, %152 : vector<8x1xf32>
    %c2_i32 = arith.constant 2 : i32
    %154 = vector.broadcast %c2_i32 : i32 to vector<8x1xi32>
    %155 = arith.cmpi eq, %2, %154 : vector<8x1xi32>
    %156 = vector.shape_cast %155 : vector<8x1xi1> to vector<8x1xi1>
    %157 = vector.broadcast %156 : vector<8x1xi1> to vector<8x16xi1>
    %158 = arith.select %157, %149, %118 : vector<8x16xi1>, vector<8x16xf32>
    %c3 = arith.constant 3 : index
    %c0_110 = arith.constant 0 : index
    %c0_111 = arith.constant 0 : index
    %159 = vector.load %arg3[%c3, %c0_110, %c0_111] : memref<4x16x32xf32, #tpu.memory_space<vmem>>, vector<1x16x32xf32>
    %160 = vector.shape_cast %159 : vector<1x16x32xf32> to vector<16x32xf32>
    %cst_112 = arith.constant dense<0.000000e+00> : vector<8x32xf32>
    %161 = tpu.matmul %149, %160, %cst_112 {dimension_numbers = #tpu.dot_dimension_numbers<[1], [0], [0], [1], [0, 0, 1, 1], [], []>} : vector<8x16xf32>, vector<16x32xf32>, vector<8x32xf32> -> vector<8x32xf32>
    %c3_113 = arith.constant 3 : index
    %c0_114 = arith.constant 0 : index
    %c0_115 = arith.constant 0 : index
    %162 = vector.load %arg4[%c3_113, %c0_114, %c0_115] : memref<4x4x32xf32, #tpu.memory_space<vmem>>, vector<1x4x32xf32>
    %163 = vector.shape_cast %162 : vector<1x4x32xf32> to vector<4x32xf32>
    %cst_116 = arith.constant dense<0.000000e+00> : vector<8x32xf32>
    %164 = tpu.matmul %1, %163, %cst_116 {dimension_numbers = #tpu.dot_dimension_numbers<[1], [0], [0], [1], [0, 0, 1, 1], [], []>} : vector<8x4xf32>, vector<4x32xf32>, vector<8x32xf32> -> vector<8x32xf32>
    %165 = arith.addf %161, %164 : vector<8x32xf32>
    %c3_117 = arith.constant 3 : index
    %c0_118 = arith.constant 0 : index
    %c0_119 = arith.constant 0 : index
    %166 = vector.load %arg5[%c3_117, %c0_118, %c0_119] : memref<4x1x32xf32, #tpu.memory_space<vmem>>, vector<1x1x32xf32>
    %167 = vector.shape_cast %166 : vector<1x1x32xf32> to vector<1x32xf32>
    %168 = vector.broadcast %167 : vector<1x32xf32> to vector<8x32xf32>
    %169 = arith.addf %165, %168 : vector<8x32xf32>
    %cst_120 = arith.constant 0.000000e+00 : f32
    %170 = vector.broadcast %cst_120 : f32 to vector<8x32xf32>
    %171 = arith.maximumf %169, %170 : vector<8x32xf32>
    %c3_121 = arith.constant 3 : index
    %c0_122 = arith.constant 0 : index
    %c0_123 = arith.constant 0 : index
    %172 = vector.load %arg6[%c3_121, %c0_122, %c0_123] : memref<4x32x32xf32, #tpu.memory_space<vmem>>, vector<1x32x32xf32>
    %173 = vector.shape_cast %172 : vector<1x32x32xf32> to vector<32x32xf32>
    %cst_124 = arith.constant dense<0.000000e+00> : vector<8x32xf32>
    %174 = tpu.matmul %171, %173, %cst_124 {dimension_numbers = #tpu.dot_dimension_numbers<[1], [0], [0], [1], [0, 0, 1, 1], [], []>} : vector<8x32xf32>, vector<32x32xf32>, vector<8x32xf32> -> vector<8x32xf32>
    %c3_125 = arith.constant 3 : index
    %c0_126 = arith.constant 0 : index
    %c0_127 = arith.constant 0 : index
    %175 = vector.load %arg7[%c3_125, %c0_126, %c0_127] : memref<4x1x32xf32, #tpu.memory_space<vmem>>, vector<1x1x32xf32>
    %176 = vector.shape_cast %175 : vector<1x1x32xf32> to vector<1x32xf32>
    %177 = vector.broadcast %176 : vector<1x32xf32> to vector<8x32xf32>
    %178 = arith.addf %174, %177 : vector<8x32xf32>
    %cst_128 = arith.constant 0.000000e+00 : f32
    %179 = vector.broadcast %cst_128 : f32 to vector<8x32xf32>
    %180 = arith.maximumf %178, %179 : vector<8x32xf32>
    %c3_129 = arith.constant 3 : index
    %c0_130 = arith.constant 0 : index
    %c0_131 = arith.constant 0 : index
    %181 = vector.load %arg8[%c3_129, %c0_130, %c0_131] : memref<4x32x17xf32, #tpu.memory_space<vmem>>, vector<1x32x17xf32>
    %182 = vector.shape_cast %181 : vector<1x32x17xf32> to vector<32x17xf32>
    %cst_132 = arith.constant dense<0.000000e+00> : vector<8x17xf32>
    %183 = tpu.matmul %180, %182, %cst_132 {dimension_numbers = #tpu.dot_dimension_numbers<[1], [0], [0], [1], [0, 0, 1, 1], [], []>} : vector<8x32xf32>, vector<32x17xf32>, vector<8x17xf32> -> vector<8x17xf32>
    %c3_133 = arith.constant 3 : index
    %c0_134 = arith.constant 0 : index
    %c0_135 = arith.constant 0 : index
    %184 = vector.load %arg9[%c3_133, %c0_134, %c0_135] : memref<4x1x17xf32, #tpu.memory_space<vmem>>, vector<1x1x17xf32>
    %185 = vector.shape_cast %184 : vector<1x1x17xf32> to vector<1x17xf32>
    %186 = vector.broadcast %185 : vector<1x17xf32> to vector<8x17xf32>
    %187 = arith.addf %183, %186 : vector<8x17xf32>
    %188 = vector.extract_strided_slice %187 {offsets = [0, 0], sizes = [8, 16], strides = [1, 1]} : vector<8x17xf32> to vector<8x16xf32>
    %189 = arith.addf %149, %188 : vector<8x16xf32>
    %190 = vector.extract_strided_slice %187 {offsets = [0, 16], sizes = [8, 1], strides = [1, 1]} : vector<8x17xf32> to vector<8x1xf32>
    %191 = vector.extract_strided_slice %33 {offsets = [0, 3], sizes = [8, 1], strides = [1, 1]} : vector<8x4xf32> to vector<8x1xf32>
    %192 = arith.mulf %190, %191 : vector<8x1xf32>
    %193 = arith.addf %153, %192 : vector<8x1xf32>
    %c3_i32 = arith.constant 3 : i32
    %194 = vector.broadcast %c3_i32 : i32 to vector<8x1xi32>
    %195 = arith.cmpi eq, %2, %194 : vector<8x1xi32>
    %196 = vector.shape_cast %195 : vector<8x1xi1> to vector<8x1xi1>
    %197 = vector.broadcast %196 : vector<8x1xi1> to vector<8x16xi1>
    %198 = arith.select %197, %189, %158 : vector<8x16xi1>, vector<8x16xf32>
    %c0_136 = arith.constant 0 : index
    %c0_137 = arith.constant 0 : index
    %199 = vector.load %arg19[%c0_136, %c0_137] : memref<8x16xf32, #tpu.memory_space<vmem>>, vector<8x16xf32>
    tpu.vector_store %arg19[%c0_136, %c0_137], %198 {strides = array<i32>} : memref<8x16xf32, #tpu.memory_space<vmem>>, vector<8x16xf32>,
    %200 = tpu.reciprocal %36 {approx = true} : vector<8x1xf32> -> vector<8x1xf32>
    %201 = arith.mulf %193, %200 : vector<8x1xf32>
    %c0_138 = arith.constant 0 : index
    %c0_139 = arith.constant 0 : index
    %202 = vector.load %arg20[%c0_138, %c0_139] : memref<8x1xf32, #tpu.memory_space<vmem>>, vector<8x1xf32>
    tpu.vector_store %arg20[%c0_138, %c0_139], %201 {strides = array<i32>} : memref<8x1xf32, #tpu.memory_space<vmem>>, vector<8x1xf32>,
    return
  }
}

</mosaic_0001>

<bundles_post_ra>
// kernel: tpu_custom_call.1
= control target key start
LH: loop header
LB: loop body
LE: loop exit
PB: predicated region body
PF: predicated region fallthrough
CT: control target
= control target key end

     0   :  { %s1531_s0 = inlined_call_operand.vmem [shape: f32[8,16], index: 0, kind: input, shape index: {}]   ;;  %s1532_s1 = inlined_call_operand.vmem [shape: f32[8,4], index: 1, kind: input, shape index: {}]   ;;  %s1533_s2 = inlined_call_operand.vmem [shape: s32[8,1], index: 2, kind: input, shape index: {}]   ;;  %s1534_s3 = inlined_call_operand.vmem [shape: f32[4,16,32], index: 3, kind: input, shape index: {}]   ;;  %s1535_s4 = inlined_call_operand.vmem [shape: f32[4,4,32], index: 4, kind: input, shape index: {}]   ;;  %s1536_s5 = inlined_call_operand.hbm [shape: f32[4,1,32], index: 5, kind: input, shape index: {}]   ;;  %s1537_s6 = inlined_call_operand.vmem [shape: f32[4,32,32], index: 6, kind: input, shape index: {}]   ;;  %s1538_s7 = inlined_call_operand.vmem [shape: f32[4,1,32], index: 7, kind: input, shape index: {}]   ;;  %s1539_s8 = inlined_call_operand.vmem [shape: f32[4,32,17], index: 8, kind: input, shape index: {}]   ;;  %s1540_s9 = inlined_call_operand.vmem [shape: f32[4,1,17], index: 9, kind: input, shape index: {}]   ;;  %s1541_s10 = inlined_call_operand.hbm [shape: f32[16,32], index: 10, kind: input, shape index: {}]   ;;  %s1542_s11 = inlined_call_operand.hbm [shape: f32[4,32], index: 11, kind: input, shape index: {}]   ;;  %s1543_s12 = inlined_call_operand.vmem [shape: f32[1,32], index: 12, kind: input, shape index: {}]   ;;  %s1544_s13 = inlined_call_operand.vmem [shape: f32[32,32], index: 13, kind: input, shape index: {}]   ;;  %s1545_s14 = inlined_call_operand.vmem [shape: f32[1,32], index: 14, kind: input, shape index: {}]   ;;  %s1546_s15 = inlined_call_operand.hbm [shape: f32[32,32], index: 15, kind: input, shape index: {}]   ;;  %s1547_s16 = inlined_call_operand.vmem [shape: f32[1,32], index: 16, kind: input, shape index: {}]   ;;  %s1548_s17 = inlined_call_operand.vmem [shape: f32[32,4], index: 17, kind: input, shape index: {}]   ;;  %s1549_s18 = inlined_call_operand.vmem [shape: f32[1,4], index: 18, kind: input, shape index: {}]   ;;  %s1550_s19 = inlined_call_operand.hbm [shape: f32[8,16], index: 19, kind: output, shape index: {0}]   ;;  %s1551_s20 = inlined_call_operand.vmem [shape: f32[8,1], index: 20, kind: output, shape index: {1}]  }
   0x1   :  { %1554 = sst [smem:[#allocation15_spill]] %s1531_s0 }
   0x2   :  { %1555 = sst [smem:[#allocation16_spill]] %s1532_s1 }
   0x3   :  { %1556 = sst [smem:[#allocation17_spill]] %s1533_s2 }
   0x4   :  { %1557 = sst [smem:[#allocation18_spill]] %s1534_s3 }
   0x5   :  { %1558 = sst [smem:[#allocation19_spill]] %s1535_s4 }
   0x6   :  { %26 = vsyncpa [#allocation3], 0 }
   0x7   :  { %27 = vsyncpa [#allocation6], 0 }
   0x8   :  { %28 = vsyncpa [#allocation9], 0  ;;  %s65_s23 = sshll.u32 %s1541_s10, 4  ;;  %s66_s23 = int_to_ptr.hbm [resolvable:$true] %s65_s23 }
   0x9   :  { %29 = vsyncpa [#allocation4], 0  ;;  %s1123_s24 = smov [#allocation5]   ;;  %s44_s26 = sshll.u32 %s1536_s5, 4  ;;  %s45_s26 = int_to_ptr.hbm [resolvable:$true] %s44_s26 }
   0xa   :  { %s67_s2 = sshll.u32 %s1123_s24, 4  ;;  %s1124_s27 = smov 128   ;;  %s68_s2 = int_to_ptr.vmem [resolvable:$true] %s67_s2 }
   0xb   :  { %s1125_s28 = smov 8   ;;  %s1126_s4 = smov [#allocation2]  }
   0xc   :  { %73 = dma.hbm_to_vmem [thread:$0]  %s66_s23, 256, %s68_s2, [#allocation6], %s1124_s27, %s1124_s27, %s1125_s28  }
   0xd   :  { %s46_s29 = sshll.u32 %s1126_s4, 4  ;;  %s1127_s30 = smov 16   ;;  %s47_s29 = int_to_ptr.vmem [resolvable:$true] %s46_s29 }
   0xe   :  { %s1128_s0 = smov 1   ;;  %s79_s1 = sshll.u32 %s1542_s11, 4  ;;  %s80_s1 = int_to_ptr.hbm [resolvable:$true] %s79_s1 }
   0xf   :  { %52 = dma.hbm_to_vmem [thread:$0]  %s45_s26, 64, %s47_s29, [#allocation3], %s1127_s30, %s1127_s30, %s1128_s0  }
  0x10   :  { %s1129_s22 = smov [#allocation7]   ;;  %s95_s23 = sshll.u32 %s1546_s15, 4  ;;  %s96_s23 = int_to_ptr.hbm [resolvable:$true] %s95_s23 }
  0x11   :  { %s81_s24 = sshll.u32 %s1129_s22, 4  ;;  %s1130_s2 = smov [#allocation8]   ;;  %s82_s24 = int_to_ptr.vmem [resolvable:$true] %s81_s24 }
  0x12   :  { %84 = dma.hbm_to_vmem [thread:$0]  %s80_s1, 64, %s82_s24, [#allocation6]  }
  0x13   :  { %s97_s3 = sshll.u32 %s1130_s2, 4  ;;  %s98_s3 = int_to_ptr.vmem [resolvable:$true] %s97_s3 }
  0x14   :  { %103 = dma.hbm_to_vmem [thread:$0]  %s96_s23, 512, %s98_s3, [#allocation9], %s1124_s27, %s1124_s27, %s1125_s28  }
  0x15   :  { %1115 = dma.done.wait [#allocation3], 64  }
  0x16   :  { %1116 = vsyncadd [#allocation3], 4294967232 }
  0x17   :  { %1117 = dma.done.wait [#allocation6], 320  }
  0x18   :  { %1118 = vsyncadd [#allocation6], 4294966976 }
  0x19   :  { %1119 = dma.done.wait [#allocation9], 512  }
  0x1a   :  { %1120 = vsyncadd [#allocation9], 4294966784  ;;  %vm136_vm0 = vcmask 1043456   ;;  %vm132_vm1 = vcmask 31744   ;;  %v130_v0 = vld [vmem:[#allocation5 + $0x8] sm:$0xff]  ;;  %v129_v2 = vld [vmem:[#allocation5] sm:$0xff] }
  0x1b   :  { %v131_v1 = vld [vmem:[#allocation7] sm:$0xf]  ;;  %178 = vmatpush.msra.mxu1 %v130_v0  ;;  %s1559_s26 = sld [smem:[#allocation16_spill]]  ;;  %vm160_vm2 = vcmask 130048   ;;  %v193_v5 = vld [vmem:[%s1544_s13 + $0x18] sm:$0xff]  ;;  %v191_v7 = vld [vmem:[%s1544_s13 + $0x8] sm:$0xff] }
  0x1c   :  { %884 = vmatpush.msk.msra.mxu0 %vm136_vm0, %v131_v1  ;;  %s1560_s4 = sld [smem:[#allocation15_spill]]  ;;  %214 = vmatpush.msra.mxu2 %v193_v5  ;;  %v192_v6 = vld [vmem:[%s1544_s13 + $0x10] sm:$0xff]  ;;  %v190_v8 = vld [vmem:[%s1544_s13] sm:$0xff]  ;;  %vm198_vm3 = vcmask 261120   ;;  %v225_v19 = vld [vmem:[#allocation8 + $0x10] sm:$0xff]  ;;  %v1131_v59 = vmov 0  }
  0x1d   :  { %179 = vmatpush.msra.mxu1 %v129_v2  ;;  %s1561_s2 = sld [smem:[#allocation18_spill]]  ;;  %v967_v13 = vld [vmem:[%s1543_s12] ss:$0 sm:$0xff]  ;;  %v226_v18 = vld [vmem:[#allocation8 + $0x18] sm:$0xff]  ;;  %v223_v21 = vld [vmem:[#allocation8] sm:$0xff]  ;;  %964 = vset.pattern.permute.xlu2 %v1131_v59  ;;  %s1132_s29 = smov 13  }
  0x1e   :  { %215 = vmatpush.msra.mxu2 %v192_v6  ;;  %s1562_s27 = sld [smem:[#allocation19_spill]]  ;;  %246 = vmatpush.msra.mxu3 %v226_v18  ;;  %v224_v20 = vld [vmem:[#allocation8 + $0x8] sm:$0xff]  ;;  %v364_v22 = vld [vmem:[%s1537_s6 + $0x18] sm:$0xff]  ;;  %v363_v23 = vld [vmem:[%s1537_s6 + $0x10] sm:$0xff]  ;;  %s1133_s0 = smov 15  }
  0x1f   :  { %v362_v24 = vld [vmem:[%s1537_s6 + $0x8] sm:$0xff]  ;;  %v361_v25 = vld [vmem:[%s1537_s6] sm:$0xff]  ;;  %v258_v36 = vld [vmem:[%s1548_s17 + $0x18] sm:$0xff]  ;;  %965 = vset.pattern.permute.xlu1 %v1131_v59  ;;  %966 = vset.pattern.permute.xlu0 %v1131_v59  ;;  %s1134_s10 = smov 14  }
  0x20   :  { %216 = vmatpush.msra.mxu2 %v191_v7  ;;  %247 = vmatpush.msra.mxu3 %v225_v19  ;;  %v968_v26 = vld [vmem:[%s1545_s14] ss:$0 sm:$0xff]  ;;  %v257_v37 = vld [vmem:[%s1548_s17 + $0x10] sm:$0xff]  ;;  %v256_v38 = vld [vmem:[%s1548_s17 + $0x8] sm:$0xff] }
  0x21   :  { %v1260_v3 = vld [vmem:[%s1559_s26] sm:$0xff]  ;;  %278 = vmatpush.msrb.mxu0 %v258_v36  ;;  %v396_v40 = vld [vmem:[%s1539_s8 + $0x18] sm:$0xff]  ;;  %v395_v41 = vld [vmem:[%s1539_s8 + $0x10] sm:$0xff] }
  0x22   :  { %v1265_v4 = vld [vmem:[%s1560_s4] sm:$0xff]  ;;  %885 = vmatmul.msk.f32.vlgmr.msra.gmra.mxu0 %vm132_vm1, %v1260_v3  ;;  %217 = vmatpush.msra.mxu2 %v190_v8  ;;  %v394_v42 = vld [vmem:[%s1539_s8 + $0x8] sm:$0xff]  ;;  %s1563_s4 = sld [smem:[#allocation17_spill]]  ;;  %v904_v18 = vld [vmem:[%s1537_s6 + $0x30] sm:$0xff] }
  0x23   :  { %886 = vmatmul.msk.f32.vlgmr.msra.gmra.mxu1 %vm160_vm2, %v1265_v4  ;;  %v310_v9 = vld [vmem:[%s1561_s2 + $0x8] sm:$0xff]  ;;  %v309_v10 = vld [vmem:[%s1561_s2] sm:$0xff]  ;;  %248 = vmatpush.msra.mxu3 %v224_v20  ;;  %v897_v52 = vld [vmem:[%s1561_s2 + $0x18] sm:$0xff] }
  0x24   :  { %v311_v11 = vld [vmem:[%s1562_s27] sm:$0xf]  ;;  %349 = vmatpush.msrb.mxu2 %v310_v9  ;;  %279 = vmatpush.msrb.mxu0 %v257_v37  ;;  %v896_v53 = vld [vmem:[%s1561_s2 + $0x10] sm:$0xff]  ;;  %v898_v54 = vld [vmem:[%s1562_s27 + $0x4] sm:$0xf] }
  0x25   :  { %891 = vmatpush.msk.msrb.mxu1 %vm136_vm0, %v311_v11  ;;  %249 = vmatpush.msra.mxu3 %v223_v21  ;;  %v969_v30 = vld [vmem:[#allocation2] ss:$0 sm:$0xff]  ;;  %v903_v19 = vld [vmem:[%s1537_s6 + $0x28] sm:$0xff]  ;;  %v911_v21 = vld [vmem:[%s1539_s8 + $0x38] sm:$0xff] }
  0x26   :  { %350 = vmatpush.msrb.mxu2 %v309_v10  ;;  %v255_v39 = vld [vmem:[%s1548_s17] sm:$0xff]  ;;  %280 = vmatpush.msrb.mxu0 %v256_v38  ;;  %v916_v38 = vld [vmem:[%s1562_s27 + $0x8] sm:$0xf]  ;;  %s868_s17 = sshll.u32 %s1550_s19, 4  ;;  %s869_s17 = int_to_ptr.hbm [resolvable:$true] %s868_s17 }
  0x27   :  { %384 = vmatpush.msrb.mxu3 %v364_v22  ;;  %v393_v43 = vld [vmem:[%s1539_s8] sm:$0xff]  ;;  %899 = vmatpush.msk.msra.mxu1 %vm136_vm0, %v898_v54  ;;  %v910_v22 = vld [vmem:[%s1539_s8 + $0x30] sm:$0xff] }
  0x28   :  { %281 = vmatpush.msrb.mxu0 %v255_v39  ;;  %v970_v44 = vld [vmem:[%s1547_s16] ss:$0 sm:$0xff]  ;;  %v923_v39 = vld [vmem:[%s1537_s6 + $0x58] sm:$0xff] }
  0x29   :  { %385 = vmatpush.msrb.mxu3 %v363_v23  ;;  %v971_v47 = vld [vmem:[%s1538_s7] ss:$0 sm:$0xff] }
  0x2a   :  { %416 = vmatpush.msra.mxu0 %v396_v40  ;;  %v972_v55 = vld [vmem:[%s1549_s18] ss:$0 sm:$0xff]  ;;  %v976_v40 = vld [vmem:[%s1540_s9 + $0x1] ss:$0 sm:$0xff] }
  0x2b   :  { %892 = vmatmul.msk.f32.vlgmr.msrb.gmra.mxu1 %vm132_vm1, %v1260_v3  ;;  %386 = vmatpush.msrb.mxu3 %v362_v24  ;;  %v973_v60 = vld [vmem:[%s1540_s9] ss:$0 sm:$0xff]  ;;  %v974_v24 = vld [vmem:[#allocation2 + $0x1] ss:$0 sm:$0xff] }
  0x2c   :  { %417 = vmatpush.msra.mxu0 %v395_v41  ;;  %v902_v20 = vld [vmem:[%s1537_s6 + $0x20] sm:$0xff]  ;;  %917 = vmatpush.msk.msrb.mxu1 %vm136_vm0, %v916_v38 }
  0x2d   :  { %387 = vmatpush.msrb.mxu3 %v361_v25  ;;  %v914_v37 = vld [vmem:[%s1561_s2 + $0x20] sm:$0xff] }
  0x2e   :  { %418 = vmatpush.msra.mxu0 %v394_v42 }
  0x30   :  { %419 = vmatpush.msra.mxu0 %v393_v43 }
  0x33   :  { %900 = vmatmul.msk.f32.vlgmr.msra.gmra.mxu1 %vm132_vm1, %v1260_v3 }
  0x3b   :  { %918 = vmatmul.msk.f32.vlgmr.msrb.gmra.mxu1 %vm132_vm1, %v1260_v3 }
  0x9f   :  { %v157_v12 = vpop.f32.mrf.mxu0 }
  0xa0   :  { %v181_v14 = vpop.f32.mrf.mxu1 }
  0xa1   :  { %v182_v15 = vadd.f32 %v181_v14, %v157_v12 }
  0xa3   :  { %v188_v16 = vadd.f32 %v967_v13, %v182_v15  ;;  %v1382_v13 = vld [vmem:[%s1563_s4] sm:$0xff] }
  0xa4   :  { %vm431_vm8 = vcmp.eq.s32.totalorder %v1382_v13, 0  ;;  %vm569_vm9 = vcmp.eq.s32.totalorder %v1382_v13, 1  ;;  %vm707_vm10 = vcmp.eq.s32.totalorder %v1382_v13, 2  ;;  %vm845_vm11 = vcmp.eq.s32.totalorder %v1382_v13, 3 }
  0xa5   :  { %983 = vtanh.f32 %v188_v16  ;;  %v432_v16 = vsel %vm431_vm8, 1, %v1131_v59 }
  0xa8   :  { %v332_v29 = vpop.f32.mrf.mxu1 }
  0xab   :  { %v984_v17 = vpop.eup %983 }
  0xac   :  { %887 = vmatmul.msk.f32.vlgmr.msra.gmra.mxu2 %vm198_vm3, %v984_v17  ;;  %v905_v17 = vld [vmem:[%s1537_s6 + $0x38] sm:$0xff] }
  0xad   :  { %483 = vmatpush.msra.mxu2 %v897_v52 }
  0xaf   :  { %484 = vmatpush.msra.mxu2 %v896_v53 }
  0xb0   :  { %v463_v23 = vpop.f32.mrf.mxu1 }
  0xb4   :  { %893 = vmatmul.msk.f32.vlgmr.msrb.gmra.mxu2 %vm160_vm2, %v1265_v4 }
 0x12f   :  { %v219_v27 = vpop.f32.mrf.mxu2 }
 0x130   :  { %v220_v28 = vadd.f32 %v968_v26, %v219_v27 }
 0x132   :  { %985 = vtanh.f32 %v220_v28 }
 0x137   :  { %v352_v31 = vpop.f32.mrf.mxu2 }
 0x138   :  { %v986_v32 = vpop.eup %985  ;;  %v353_v33 = vadd.f32 %v352_v31, %v332_v29  ;;  %v909_v29 = vld [vmem:[%s1539_s8 + $0x28] sm:$0xff] }
 0x139   :  { %888 = vmatmul.msk.f32.vlgmr.msra.gmra.mxu3 %vm198_vm3, %v986_v32  ;;  %v915_v31 = vld [vmem:[%s1561_s2 + $0x28] sm:$0xff]  ;;  %v570_v32 = vsel %vm569_vm9, 1, %v1131_v59 }
 0x13a   :  { %v359_v34 = vadd.f32 %v969_v30, %v353_v33  ;;  %521 = vmatpush.msra.mxu3 %v905_v17  ;;  %v908_v30 = vld [vmem:[%s1539_s8 + $0x20] sm:$0xff]  ;;  %621 = vmatpush.msrb.mxu2 %v915_v31  ;;  %v846_v31 = vsel %vm845_vm11, 1, %v1131_v59 }
 0x13b   :  { %v975_v33 = vld [vmem:[%s1538_s7 + $0x1] ss:$0 sm:$0xff] }
 0x13c   :  { %v360_v35 = vmax.f32 %v359_v34, 0.0  ;;  %522 = vmatpush.msra.mxu3 %v904_v18  ;;  %622 = vmatpush.msrb.mxu2 %v914_v37 }
 0x13e   :  { %523 = vmatpush.msra.mxu3 %v903_v19 }
 0x140   :  { %524 = vmatpush.msra.mxu3 %v902_v20  ;;  %v939_v20 = vld [vmem:[%s1537_s6 + $0x68] sm:$0xff] }
 0x141   :  { %894 = vmatmul.msk.f32.vlgmr.msrb.gmra.mxu3 %vm198_vm3, %v360_v35 }
 0x142   :  { %659 = vmatpush.msrb.mxu3 %v923_v39  ;;  %v982_v39 = vld [vmem:[%s1540_s9 + $0x3] ss:$0 sm:$0xff] }
 0x1bc   :  { %v251_v45 = vpop.f32.mrf.mxu3 }
 0x1bd   :  { %v252_v46 = vadd.f32 %v970_v44, %v251_v45  ;;  %v922_v44 = vld [vmem:[%s1537_s6 + $0x50] sm:$0xff]  ;;  %v921_v45 = vld [vmem:[%s1537_s6 + $0x48] sm:$0xff] }
 0x1be   :  { %660 = vmatpush.msrb.mxu3 %v922_v44 }
 0x1bf   :  { %987 = vtanh.f32 %v252_v46  ;;  %v920_v46 = vld [vmem:[%s1537_s6 + $0x40] sm:$0xff] }
 0x1c0   :  { %661 = vmatpush.msrb.mxu3 %v921_v45 }
 0x1c2   :  { %662 = vmatpush.msrb.mxu3 %v920_v46 }
 0x1c4   :  { %v389_v48 = vpop.f32.mrf.mxu3 }
 0x1c5   :  { %v988_v49 = vpop.eup %987  ;;  %v390_v50 = vadd.f32 %v971_v47, %v389_v48  ;;  %v929_v47 = vld [vmem:[%s1539_s8 + $0x58] sm:$0xff]  ;;  %v928_v48 = vld [vmem:[%s1539_s8 + $0x50] sm:$0xff] }
 0x1c6   :  { %889 = vmatmul.msk.f32.vlgmr.msrb.gmra.mxu0 %vm198_vm3, %v988_v49  ;;  %v601_v49 = vpop.f32.mrf.mxu1 }
 0x1c7   :  { %v392_v51 = vmax.f32 %v390_v50, 0.0  ;;  %555 = vmatpush.msrb.mxu0 %v911_v21  ;;  %v977_v50 = vld [vmem:[#allocation2 + $0x2] ss:$0 sm:$0xff]  ;;  %v947_v21 = vld [vmem:[%s1539_s8 + $0x78] sm:$0xff] }
 0x1c9   :  { %556 = vmatpush.msrb.mxu0 %v910_v22  ;;  %v946_v22 = vld [vmem:[%s1539_s8 + $0x70] sm:$0xff] }
 0x1cb   :  { %557 = vmatpush.msrb.mxu0 %v909_v29  ;;  %v945_v29 = vld [vmem:[%s1539_s8 + $0x68] sm:$0xff] }
 0x1cd   :  { %558 = vmatpush.msrb.mxu0 %v908_v30  ;;  %v944_v30 = vld [vmem:[%s1539_s8 + $0x60] sm:$0xff] }
 0x1ce   :  { %895 = vmatmul.msk.f32.vlgmr.msra.gmra.mxu0 %vm198_vm3, %v392_v51 }
 0x1cf   :  { %693 = vmatpush.msra.mxu0 %v929_v47 }
 0x1d1   :  { %694 = vmatpush.msra.mxu0 %v928_v48 }
 0x243   :  { %v283_v56 = vpop.f32.mrf.mxu0 }
 0x244   :  { %v284_v57 = vadd.f32 %v972_v55, %v283_v56  ;;  %v927_v55 = vld [vmem:[%s1539_s8 + $0x48] sm:$0xff]  ;;  %v926_v56 = vld [vmem:[%s1539_s8 + $0x40] sm:$0xff] }
 0x245   :  { %695 = vmatpush.msra.mxu0 %v927_v55 }
 0x246   :  { %v890_v58 = vmul.f32 -1.442695, %v284_v57  ;;  %v933_v57 = vld [vmem:[%s1561_s2 + $0x38] sm:$0xff] }
 0x247   :  { %696 = vmatpush.msra.mxu0 %v926_v56 }
 0x248   :  { %989 = vpow2.f32 %v890_v58  ;;  %v708_v58 = vsel %vm707_vm10, 1, %v1131_v59 }
 0x24b   :  { %v421_v61 = vpop.f32.mrf.mxu0 }
 0x24c   :  { %v1371_v62 = vadd.f32 %v973_v60, %v421_v61  ;;  %v978_v60 = vld [vmem:[%s1538_s7 + $0x2] ss:$0 sm:$0xff] }
 0x24e   :  { %v990_v63 = vpop.eup %989  ;;  %v1375_v0 = vadd.f32 %v1371_v62, %v1265_v4 }
 0x24f   :  { %v289_v1 = vadd.f32 1.0, %v990_v63 }
 0x250   :  { %901 = vmatmul.msk.f32.vlgmr.msra.gmra.mxu2 %vm160_vm2, %v1375_v0 }
 0x251   :  { %991 = vrcp.f32 %v289_v1  ;;  %v301_v7 = vand.u32 2147483648, %v289_v1  ;;  %v299_v9 = vand.u32 2147483647, %v289_v1  ;;  %vm295_vm5 = vweird.f32 %v289_v1  ;;  %759 = vmatpush.msra.mxu2 %v933_v57 }
 0x253   :  { %v302_v11 = vor.u32 1.1754944e-38, %v301_v7  ;;  %vm300_vm7 = vcmp.eq.f32.partialorder %v299_v9, 8.507059e+37  ;;  %v979_v9 = vld [vmem:[%s1540_s9 + $0x2] ss:$0 sm:$0xff]  ;;  %s1136_s9 = smov 112  }
 0x257   :  { %v992_v2 = vpop.eup %991 }
 0x258   :  { %v291_v5 = vmul.f32 %v992_v2, %v289_v1  ;;  %vm296_vm4 = vweird.f32 %v992_v2 }
 0x259   :  { %vm297_vm6 = vmor %vm295_vm5, %vm296_vm4 }
 0x25a   :  { %v292_v6 = vsub.f32 1.0, %v291_v5  ;;  %v934_v5 = vld [vmem:[%s1562_s27 + $0xc] sm:$0xf] }
 0x25b   :  { %935 = vmatpush.msk.msra.mxu1 %vm136_vm0, %v934_v5  ;;  %vm859_vm0 = vcmask 7168  }
 0x25c   :  { %v293_v8 = vmul.f32 %v992_v2, %v292_v6  ;;  %v941_v6 = vld [vmem:[%s1537_s6 + $0x78] sm:$0xff]  ;;  %936 = vmatmul.msk.f32.vlgmr.msra.gmra.mxu1 %vm132_vm1, %v1260_v3  ;;  %v940_v3 = vld [vmem:[%s1537_s6 + $0x70] sm:$0xff] }
 0x25e   :  { %v294_v10 = vadd.f32 %v992_v2, %v293_v8 }
 0x260   :  { %v298_v12 = vsel %vm297_vm6, %v992_v2, %v294_v10  ;;  %v932_v2 = vld [vmem:[%s1561_s2 + $0x30] sm:$0xff] }
 0x261   :  { %v303_v4 = vsel %vm300_vm7, %v302_v11, %v298_v12  ;;  %760 = vmatpush.msra.mxu2 %v932_v2 }
 0x262   :  { %840 = vrot.lane.b32.xlu2 %v303_v4, %s1132_s29  ;;  %564 = vrot.lane.b32.xlu1 %v303_v4, %s1133_s0  ;;  %v305_v14 = vand.u32 2147483647, %v303_v4 }
 0x264   :  { %v306_v15 = vsel %vm132_vm1, %v305_v14, 0.0 }
 0x265   :  { %307 = vadd.xlane.f32.xlu0 %v306_v15 }
 0x26a   :  { %434 = vperm.xlu2 %964, %v432_v16   ;;  %702 = vrot.lane.b32.xlu1 %v303_v4, %s1134_s10 }
 0x272   :  { %572 = vperm.xlu1 %965, %v570_v32   ;;  %710 = vperm.xlu2 %964, %v708_v58   ;;  %v981_v32 = vld [vmem:[%s1538_s7 + $0x3] ss:$0 sm:$0xff]  ;;  %s1135_s7 = smov [#allocation10]  }
 0x273   :  { %s866_s10 = sshll.u32 %s1135_s7, 4  ;;  %s867_s10 = int_to_ptr.vmem [resolvable:$true] %s866_s10 }
 0x279   :  { %426 = vrot.lane.b32.xlu0 %v303_v4, %s1127_s30 }
 0x27a   :  { %848 = vperm.xlu1 %965, %v846_v31  }
 0x2d3   :  { %v486_v25 = vpop.f32.mrf.mxu2 }
 0x2d4   :  { %v487_v26 = vadd.f32 %v486_v25, %v463_v23  ;;  %v565_v8 = vpop.permute.xlu1 %564 }
 0x2d6   :  { %v494_v27 = vadd.f32 %v974_v24, %v487_v26  ;;  %v980_v24 = vld [vmem:[#allocation2 + $0x3] ss:$0 sm:$0xff] }
 0x2d8   :  { %v495_v28 = vmax.f32 %v494_v27, 0.0  ;;  %v308_v7 = vpop.xlane.xlu0 %307 }
 0x2d9   :  { %v739_v23 = vpop.f32.mrf.mxu1  ;;  %993 = vrcp.f32 %v308_v7 }
 0x2da   :  { %907 = vmatmul.msk.f32.vlgmr.msra.gmra.mxu3 %vm198_vm3, %v495_v28 }
 0x2db   :  { %797 = vmatpush.msra.mxu3 %v941_v6 }
 0x2dc   :  { %v703_v15 = vpop.permute.xlu1 %702 }
 0x2dd   :  { %798 = vmatpush.msra.mxu3 %v940_v3 }
 0x2df   :  { %799 = vmatpush.msra.mxu3 %v939_v20 }
 0x2e4   :  { %v573_v38 = vpop.permute.xlu1 %572 }
 0x2e5   :  { %vm574_vm13 = vcmp.eq.s32.totalorder %v573_v38, 1 }
 0x2eb   :  { %v427_v10 = vpop.permute.xlu0 %426 }
 0x2ec   :  { %v429_v4 = vmul.f32 %v427_v10, %v1371_v62  ;;  %v938_v62 = vld [vmem:[%s1537_s6 + $0x60] sm:$0xff]  ;;  %v849_v59 = vpop.permute.xlu1 %848 }
 0x2ed   :  { %800 = vmatpush.msra.mxu3 %v938_v62  ;;  %vm850_vm15 = vcmp.eq.s32.totalorder %v849_v59, 1 }
 0x35d   :  { %v526_v34 = vpop.f32.mrf.mxu3 }
 0x35e   :  { %v527_v35 = vadd.f32 %v975_v33, %v526_v34 }
 0x360   :  { %v529_v36 = vmax.f32 %v527_v35, 0.0 }
 0x362   :  { %913 = vmatmul.msk.f32.vlgmr.msrb.gmra.mxu0 %vm198_vm3, %v529_v36  ;;  %v841_v36 = vpop.permute.xlu2 %840 }
 0x363   :  { %831 = vmatpush.msrb.mxu0 %v947_v21 }
 0x365   :  { %832 = vmatpush.msrb.mxu0 %v946_v22 }
 0x367   :  { %833 = vmatpush.msrb.mxu0 %v945_v29 }
 0x369   :  { %834 = vmatpush.msrb.mxu0 %v944_v30 }
 0x36a   :  { %v435_v37 = vpop.permute.xlu2 %434 }
 0x36b   :  { %vm436_vm12 = vcmp.eq.s32.totalorder %v435_v37, 1 }
 0x372   :  { %v711_v13 = vpop.permute.xlu2 %710 }
 0x373   :  { %vm712_vm14 = vcmp.eq.s32.totalorder %v711_v13, 1 }
 0x3df   :  { %v560_v41 = vpop.f32.mrf.mxu0 }
 0x3e0   :  { %v561_v42 = vadd.f32 %v976_v40, %v560_v41 }
 0x3e2   :  { %v1438_v43 = vadd.f32 %v561_v42, %v1375_v0  ;;  %v567_v11 = vmul.f32 %v565_v8, %v561_v42  ;;  %v437_v42 = vsel %vm436_vm12, %v1375_v0, 0.0 }
 0x3e4   :  { %919 = vmatmul.msk.f32.vlgmr.msrb.gmra.mxu2 %vm160_vm2, %v1438_v43  ;;  %v568_v16 = vadd.f32 %v567_v11, %v429_v4  ;;  %v575_v44 = vsel %vm574_vm13, %v1438_v43, %v437_v42 }
 0x467   :  { %v624_v51 = vpop.f32.mrf.mxu2 }
 0x468   :  { %v625_v52 = vadd.f32 %v624_v51, %v601_v49 }
 0x46a   :  { %v632_v53 = vadd.f32 %v977_v50, %v625_v52  ;;  %v994_v50 = vpop.eup %993 }
 0x46c   :  { %v633_v54 = vmax.f32 %v632_v53, 0.0 }
 0x46e   :  { %925 = vmatmul.msk.f32.vlgmr.msrb.gmra.mxu3 %vm198_vm3, %v633_v54 }
 0x4f1   :  { %v664_v61 = vpop.f32.mrf.mxu3 }
 0x4f2   :  { %v665_v63 = vadd.f32 %v978_v60, %v664_v61 }
 0x4f4   :  { %v667_v1 = vmax.f32 %v665_v63, 0.0 }
 0x4f6   :  { %931 = vmatmul.msk.f32.vlgmr.msra.gmra.mxu0 %vm198_vm3, %v667_v1 }
 0x573   :  { %v698_v12 = vpop.f32.mrf.mxu0 }
 0x574   :  { %v699_v14 = vadd.f32 %v979_v9, %v698_v12 }
 0x576   :  { %v701_v17 = vadd.f32 %v699_v14, %v1438_v43  ;;  %v705_v18 = vmul.f32 %v703_v15, %v699_v14 }
 0x578   :  { %v706_v19 = vadd.f32 %v705_v18, %v568_v16  ;;  %937 = vmatmul.msk.f32.vlgmr.msra.gmra.mxu2 %vm160_vm2, %v701_v17  ;;  %v713_v47 = vsel %vm712_vm14, %v701_v17, %v575_v44 }
 0x5fb   :  { %v762_v25 = vpop.f32.mrf.mxu2 }
 0x5fc   :  { %v763_v26 = vadd.f32 %v762_v25, %v739_v23 }
 0x5fe   :  { %v770_v27 = vadd.f32 %v980_v24, %v763_v26 }
 0x600   :  { %v771_v28 = vmax.f32 %v770_v27, 0.0 }
 0x602   :  { %943 = vmatmul.msk.f32.vlgmr.msra.gmra.mxu3 %vm198_vm3, %v771_v28 }
 0x685   :  { %v802_v33 = vpop.f32.mrf.mxu3 }
 0x686   :  { %v803_v34 = vadd.f32 %v981_v32, %v802_v33 }
 0x688   :  { %v805_v35 = vmax.f32 %v803_v34, 0.0 }
 0x68a   :  { %949 = vmatmul.msk.f32.vlgmr.msrb.gmra.mxu0 %vm198_vm3, %v805_v35 }
 0x707   :  { %v836_v40 = vpop.f32.mrf.mxu0 }
 0x708   :  { %v837_v41 = vadd.f32 %v982_v39, %v836_v40 }
 0x70a   :  { %v839_v45 = vadd.f32 %v837_v41, %v701_v17  ;;  %v843_v46 = vmul.f32 %v841_v36, %v837_v41 }
 0x70c   :  { %v844_v48 = vadd.f32 %v843_v46, %v706_v19  ;;  %v851_v49 = vsel %vm850_vm15, %v839_v45, %v713_v47 }
 0x70d   :  { %852 = vst.msk [vmem:[#allocation10] sm:$0xff] %vm160_vm2, %v851_v49 }
 0x70e   :  { %v854_v51 = vmul.f32 %v994_v50, %v844_v48  ;;  %871 = dma.vmem_to_hbm [thread:$0]  %s867_s10, 128, %s869_s17, [#allocation4]  }
 0x710   :  { %856 = vrot.lane.b32.xlu2 %v854_v51, %s1136_s9 }
 0x76a   :  { %v857_v52 = vpop.permute.xlu2 %856 }
 0x76b   :  { %860 = vst.msk [vmem:[%s1551_s20] sm:$0xff] %vm859_vm0, %v857_v52 }
 0x76c   :  { %1121 = dma.done.wait [#allocation4], 128  }
 0x76d   :  { %1122 = vsyncadd [#allocation4], 4294967168 }
 0x76e   :  { %880 = vsyncpa [#allocation3], 1 }
 0x76f   :  { %881 = vsyncpa [#allocation6], 1 }
 0x770   :  { %882 = vsyncpa [#allocation9], 1 }
 0x771   :  { %883 = vsyncpa [#allocation4], 1 }

</bundles_post_ra>
